<compile_context>
chip_gen: v5e
topology: v5e:2x2
jax: 0.10.0
libtpu: 0.0.40
codegen_flags: <defaults>
</compile_context>

<pallas_src>
import functools

import numpy as np
import jax
import jax.numpy as jnp
from jax.experimental import pallas as pl
from jax.experimental.pallas import tpu as pltpu

EPS = 1e-5                     # nn.BatchNorm2d default eps
LANE = 128
MAX_TILE_K = 2048


def _round_up(x, m):
    return (x + m - 1) // m * m


def _cdiv(a, b):
    return (a + b - 1) // b


def _vmem_budget_bytes():
    try:
        cap = pltpu.get_tpu_info().vmem_capacity_bytes
    except Exception:
        cap = 128 * 1024 * 1024
    # Half of physical VMEM: 64 MiB on 128-MiB parts (v5e/v6e), 32 MiB on v7x.
    return max(32 * 1024 * 1024, min(cap // 2, 96 * 1024 * 1024))


VMEM_BUDGET = _vmem_budget_bytes()
TILE_M_TARGET = 1024 if VMEM_BUDGET >= 64 * 1024 * 1024 else 512


def _pad2d(a, rows, cols):
    """Clip then zero-pad a 2D array to (rows, cols); dtype-preserving."""
    a = a[:rows, :cols]
    pr, pc = rows - a.shape[0], cols - a.shape[1]
    if pr or pc:
        a = jnp.pad(a, ((0, pr), (0, pc)))
    return a


def _pick_tile_m(M):
    tm = min(TILE_M_TARGET, _round_up(M, LANE))
    # Guarantee >=2 M tiles whenever possible so the "parallel" M axis can
    # shard across both TensorCores on v7x (and megacore generally).
    if M > LANE and _round_up(M, tm) // tm < 2:
        tm = _round_up(_cdiv(M, 2), LANE)
    return tm


def _pick_tile_k(Kp):
    """Largest multiple of 128 that divides Kp and is <= MAX_TILE_K."""
    if Kp <= MAX_TILE_K:
        return Kp
    q = Kp // LANE
    best = 1
    for d in range(1, q + 1):
        if q % d == 0 and LANE * d <= MAX_TILE_K:
            best = d
    return LANE * best


# ----------------------------------------------------------------------------
# Kernel A: tiled conv matmul (bf16 MXU operands, f32 accumulate) + per-tile
# BN partial sums.  grid = (num_m, num_k); K axis is the accumulator axis.
# Weights are a single VMEM-resident block; the K chunk is sliced in-kernel.
# ----------------------------------------------------------------------------
def _conv_stats_kernel(tile_k, p_ref, w_ref, y_ref, sum_ref, sq_ref, acc_ref):
    k = pl.program_id(1)

    @pl.when(k == 0)
    def _():
        acc_ref[...] = jnp.zeros_like(acc_ref)

    k_off = pl.multiple_of(k * tile_k, LANE)
    acc_ref[...] += jnp.dot(p_ref[...], w_ref[pl.ds(k_off, tile_k), :],
                            preferred_element_type=jnp.float32)

    @pl.when(k == pl.num_programs(1) - 1)
    def _():
        acc = acc_ref[...]
        y_ref[...] = acc.astype(y_ref.dtype)           # bf16 store (half bytes)
        # Zero-padded M rows contribute 0 to both sums -> stats stay exact.
        sum_ref[0] = jnp.sum(acc, axis=0, keepdims=True)
        sq_ref[0] = jnp.sum(acc * acc, axis=0, keepdims=True)


def conv_stats(patches, wmat):
    """patches: (M, K), wmat: (K, Cout) -> y:(Mp, Cp) bf16, per-tile partial
    sums / sum-of-squares (f32), and the (tile_m, Mp, Cp) tiling used."""
    M, K = patches.shape
    Cout = wmat.shape[1]

    Cp = _round_up(Cout, LANE)
    Kp = _round_up(K, LANE)                 # pad K only to 128, not to tile_k
    tile_k = _pick_tile_k(Kp)
    tile_m = _pick_tile_m(M)
    Mp = _round_up(M, tile_m)
    num_m, num_k = Mp // tile_m, Kp // tile_k

    p = _pad2d(patches.astype(jnp.bfloat16), Mp, Kp)
    w = _pad2d(wmat.astype(jnp.bfloat16), Kp, Cp)

    patch_spec = pl.BlockSpec((tile_m, tile_k), lambda m, k: (m, k))
    if num_m * num_k >= 4:
        try:    # deeper patch buffering on long grids (hide DMA on v5e/v6e)
            patch_spec = pl.BlockSpec((tile_m, tile_k), lambda m, k: (m, k),
                                      pipeline_mode=pl.Buffered(3))
        except Exception:
            pass

    y, ysum, ysq = pl.pallas_call(
        functools.partial(_conv_stats_kernel, tile_k),
        grid=(num_m, num_k),
        in_specs=[
            patch_spec,
            pl.BlockSpec((Kp, Cp), lambda m, k: (0, 0)),   # resident weights
        ],
        out_specs=[
            pl.BlockSpec((tile_m, Cp), lambda m, k: (m, 0)),
            pl.BlockSpec((1, 1, Cp), lambda m, k: (m, 0, 0)),
            pl.BlockSpec((1, 1, Cp), lambda m, k: (m, 0, 0)),
        ],
        out_shape=[
            jax.ShapeDtypeStruct((Mp, Cp), jnp.bfloat16),
            jax.ShapeDtypeStruct((num_m, 1, Cp), jnp.float32),
            jax.ShapeDtypeStruct((num_m, 1, Cp), jnp.float32),
        ],
        scratch_shapes=[pltpu.VMEM((tile_m, Cp), jnp.float32)],
        compiler_params=pltpu.CompilerParams(
            dimension_semantics=("parallel", "arbitrary"),
            vmem_limit_bytes=VMEM_BUDGET),
    )(p, w)
    return y, ysum, ysq, (tile_m, Mp, Cp)


def finalize_bn(ysum, ysq, m_true, gamma, beta, cp, eps=EPS):
    """Tiny plain-JAX reduction of per-tile partial sums into lane-aligned
    (1, Cp) per-channel scale/shift for the epilogue kernel."""
    total = jnp.sum(ysum[:, 0, :], axis=0)             # (Cp,)
    total_sq = jnp.sum(ysq[:, 0, :], axis=0)           # (Cp,)
    mean = total / m_true
    # Single-pass E[y^2]-E[y]^2 in f32; adequate for BN-scale activations.
    var = jnp.maximum(total_sq / m_true - mean * mean, 0.0)
    inv = jax.lax.rsqrt(var + eps)
    g = jnp.zeros((cp,), jnp.float32).at[:gamma.shape[0]].set(
        gamma.astype(jnp.float32))
    b = jnp.zeros((cp,), jnp.float32).at[:beta.shape[0]].set(
        beta.astype(jnp.float32))
    scale = g * inv
    shift = b - mean * scale
    return scale.reshape(1, cp), shift.reshape(1, cp)


# ----------------------------------------------------------------------------
# Kernel B: BN affine + (optional) bf16 residual (with its own affine only for
# the projection path) + ReLU.  Fully parallel over M tiles.
# ----------------------------------------------------------------------------
def _affine_res_kernel(apply_relu, has_res, res_affine, *refs):
    if has_res and res_affine:
        y_ref, s_ref, b_ref, r_ref, rs_ref, rb_ref, o_ref = refs
    elif has_res:
        y_ref, s_ref, b_ref, r_ref, o_ref = refs
    else:
        y_ref, s_ref, b_ref, o_ref = refs
    out = y_ref[...].astype(jnp.float32) * s_ref[...] + b_ref[...]
    if has_res:
        r = r_ref[...].astype(jnp.float32)
        if res_affine:
            r = r * rs_ref[...] + rb_ref[...]
        out = out + r
    if apply_relu:
        out = jnp.maximum(out, 0.0)
    o_ref[...] = out.astype(o_ref.dtype)


def affine_act(y, scale, shift, residual=None, res_scale=None, res_shift=None,
               *, apply_relu, res_affine=False, out_dtype=jnp.float32, tile_m):
    Mp, Cp = y.shape
    num_m = Mp // tile_m
    args = [y, scale, shift]
    in_specs = [
        pl.BlockSpec((tile_m, Cp), lambda m: (m, 0)),
        pl.BlockSpec((1, Cp), lambda m: (0, 0)),
        pl.BlockSpec((1, Cp), lambda m: (0, 0)),
    ]
    has_res = residual is not None
    if has_res:
        args.append(residual)
        in_specs.append(pl.BlockSpec((tile_m, Cp), lambda m: (m, 0)))
        if res_affine:
            args += [res_scale, res_shift]
            in_specs += [pl.BlockSpec((1, Cp), lambda m: (0, 0)),
                         pl.BlockSpec((1, Cp), lambda m: (0, 0))]
    kernel = functools.partial(_affine_res_kernel, apply_relu, has_res,
                               res_affine)
    return pl.pallas_call(
        kernel,
        grid=(num_m,),
        in_specs=in_specs,
        out_specs=pl.BlockSpec((tile_m, Cp), lambda m: (m, 0)),
        out_shape=jax.ShapeDtypeStruct((Mp, Cp), out_dtype),
        compiler_params=pltpu.CompilerParams(
            dimension_semantics=("parallel",),
            vmem_limit_bytes=VMEM_BUDGET),
    )(*args)


# ----------------------------------------------------------------------------
# Plain-JAX glue: im2col, weight reshaping, block composition.
# ----------------------------------------------------------------------------
def im2col(x_nhwc, kh, kw, stride, pad):
    N, H, W, C = x_nhwc.shape
    xp = jnp.pad(x_nhwc, ((0, 0), (pad, pad), (pad, pad), (0, 0)))
    Ho = (H + 2 * pad - kh) // stride + 1
    Wo = (W + 2 * pad - kw) // stride + 1
    cols = []
    for ky in range(kh):
        for kx in range(kw):
            sl = xp[:, ky:ky + (Ho - 1) * stride + 1:stride,
                       kx:kx + (Wo - 1) * stride + 1:stride, :]
            cols.append(sl)
    patches = jnp.concatenate(cols, axis=-1)               # (N, Ho, Wo, kh*kw*C)
    return patches.reshape(N * Ho * Wo, kh * kw * C), (N, Ho, Wo)


def conv_weight_to_matmul(w_oihw):
    # PyTorch OIHW -> (KH*KW*Cin, Cout), matching im2col column order (ky,kx,c).
    O, I, KH, KW = w_oihw.shape
    return jnp.transpose(w_oihw, (2, 3, 1, 0)).reshape(KH * KW * I, O)


def basic_block_forward(x_nchw, params, stride):
    in_planes = x_nchw.shape[1]
    planes = params["w1"].shape[0]
    has_proj = (stride != 1 or in_planes != planes)

    x_nhwc = jnp.transpose(x_nchw, (0, 2, 3, 1))
    x_bf16 = x_nhwc.astype(jnp.bfloat16)        # MXU operand precision

    # ---- conv1 (3x3, stride, pad=1), fused with the 1x1 projection shortcut.
    # The shortcut's 1x1-stride patches equal conv1's centre tap (ky=kx=1), so
    # wsc is lifted into rows [4*Cin, 5*Cin) and concatenated along Cout.
    w1mat = conv_weight_to_matmul(params["w1"])                  # (9*Cin, planes)
    if has_proj:
        wsc_mat = conv_weight_to_matmul(params["wsc"])           # (Cin, planes)
        lift = jnp.zeros((9 * in_planes, planes), jnp.float32)
        lift = lift.at[4 * in_planes:5 * in_planes, :].set(wsc_mat)
        wmat = jnp.concatenate([w1mat, lift], axis=1)            # (9*Cin, 2*planes)
        gamma = jnp.concatenate([params["g1"], params["gsc"]])
        beta = jnp.concatenate([params["b1"], params["bsc"]])
    else:
        wmat, gamma, beta = w1mat, params["g1"], params["b1"]

    p1, (N, Ho, Wo) = im2col(x_bf16, 3, 3, stride, 1)
    M = N * Ho * Wo
    y1, s1, q1, (tm1, Mp1, Cp1) = conv_stats(p1, wmat)
    scale1, shift1 = finalize_bn(s1, q1, M, gamma, beta, Cp1)

    # bn1-affine + ReLU -> bf16 (only the conv1 columns feed conv2).
    # TODO(synk): once conv2 is an implicit (halo-tiled) conv, fold this
    # affine+ReLU into conv2's input-tile load; with materialized im2col the
    # zero-padded border would be corrupted by the shift term.
    out1 = affine_act(y1, scale1, shift1, apply_relu=True,
                      out_dtype=jnp.bfloat16, tile_m=tm1)        # (Mp, Cp1) bf16
    out1_nhwc = out1[:M, :planes].reshape(N, Ho, Wo, planes)

    # ---- conv2 (3x3, stride=1, pad=1) + bn2 statistics.
    p2, _ = im2col(out1_nhwc, 3, 3, 1, 1)
    y2, s2, q2, (tm2, Mp2, Cp2) = conv_stats(p2,
                                             conv_weight_to_matmul(params["w2"]))
    scale2, shift2 = finalize_bn(s2, q2, M, params["g2"], params["b2"], Cp2)

    # ---- residual stream (bf16).
    if has_proj:
        # Raw shortcut-conv output came out of the fused conv1 kernel.
        res = _pad2d(y1[:M, planes:2 * planes], Mp2, Cp2)        # bf16
        rsc = jnp.zeros((1, Cp2), jnp.float32).at[0, :planes].set(
            scale1[0, planes:2 * planes])
        rsh = jnp.zeros((1, Cp2), jnp.float32).at[0, :planes].set(
            shift1[0, planes:2 * planes])
        res_affine = True
    else:
        # Identity path: NHWC flatten order matches the output flatten order
        # only because stride==1 and spatial dims are unchanged (guard above).
        res = _pad2d(x_bf16.reshape(M, in_planes), Mp2, Cp2)     # bf16
        rsc = rsh = None
        res_affine = False

    # bn2-affine + (shortcut-affine) + residual add + ReLU, one fused kernel.
    out = affine_act(y2, scale2, shift2, residual=res,
                     res_scale=rsc, res_shift=rsh, res_affine=res_affine,
                     apply_relu=True, out_dtype=jnp.float32, tile_m=tm2)
    out = out[:M, :planes].reshape(N, Ho, Wo, planes)
    return jnp.transpose(out, (0, 3, 1, 2))                      # NCHW


# ----------------------------------------------------------------------------
# Deterministic parameter initialization (synthetic; shapes from __init__).
# ----------------------------------------------------------------------------
def init_params(key, in_planes, planes, stride):
    ks = jax.random.split(key, 9)

    def conv_init(k, o, i, kh, kw):
        fan_in = i * kh * kw
        return (jax.random.normal(k, (o, i, kh, kw), jnp.float32)
                * np.sqrt(2.0 / fan_in))

    params = {
        "w1": conv_init(ks[0], planes, in_planes, 3, 3),
        "g1": 1.0 + 0.1 * jax.random.normal(ks[1], (planes,), jnp.float32),
        "b1": 0.1 * jax.random.normal(ks[2], (planes,), jnp.float32),
        "w2": conv_init(ks[3], planes, planes, 3, 3),
        "g2": 1.0 + 0.1 * jax.random.normal(ks[4], (planes,), jnp.float32),
        "b2": 0.1 * jax.random.normal(ks[5], (planes,), jnp.float32),
    }
    if stride != 1 or in_planes != planes:
        params["wsc"] = conv_init(ks[6], planes, in_planes, 1, 1)
        params["gsc"] = 1.0 + 0.1 * jax.random.normal(ks[7], (planes,), jnp.float32)
        params["bsc"] = 0.1 * jax.random.normal(ks[8], (planes,), jnp.float32)
    return params


# ----------------------------------------------------------------------------
# Pure-JAX reference (training-mode BN, matching PyTorch forward semantics).
# conv_dtype=bf16 mirrors the kernels' MXU operand rounding (intermediates in
# the Pallas path are additionally stored in bf16, hence loose tolerances).
# ----------------------------------------------------------------------------
def ref_basic_block(x, params, stride, conv_dtype=jnp.float32):
    def conv(x, w, s, p):
        return jax.lax.conv_general_dilated(
            x.astype(conv_dtype), w.astype(conv_dtype), (s, s),
            [(p, p), (p, p)], dimension_numbers=("NCHW", "OIHW", "NCHW"),
            preferred_element_type=jnp.float32)

    def bn(y, g, b):
        m = jnp.mean(y, axis=(0, 2, 3), keepdims=True)
        v = jnp.mean((y - m) ** 2, axis=(0, 2, 3), keepdims=True)
        return ((y - m) * jax.lax.rsqrt(v + EPS) * g.reshape(1, -1, 1, 1)
                + b.reshape(1, -1, 1, 1))

    in_planes, planes = x.shape[1], params["w1"].shape[0]
    out = jax.nn.relu(bn(conv(x, params["w1"], stride, 1),
                         params["g1"], params["b1"]))
    out = bn(conv(out, params["w2"], 1, 1), params["g2"], params["b2"])
    if stride != 1 or in_planes != planes:
        sc = bn(conv(x, params["wsc"], stride, 0), params["gsc"], params["bsc"])
    else:
        sc = x
    return jax.nn.relu(out + sc)


if __name__ == "__main__":
    key = jax.random.PRNGKey(0)
    # (in_planes, planes, stride, H=W): projection-shortcut and identity cases.
    for in_planes, planes, stride, hw in [(4, 8, 2, 16), (8, 8, 1, 16)]:
        key, kx, kp = jax.random.split(key, 3)
        x = jax.random.normal(kx, (2, in_planes, hw, hw), jnp.float32)  # NCHW
        params = init_params(kp, in_planes, planes, stride)

        fwd = jax.jit(functools.partial(basic_block_forward, stride=stride))
        out = jax.block_until_ready(fwd(x, params))

        # Mixed-precision reference (bf16 MXU operands); bf16-stored
        # intermediates in the Pallas path motivate the loosened tolerance.
        ref_bf16 = jax.block_until_ready(
            ref_basic_block(x, params, stride, conv_dtype=jnp.bfloat16))
        np.testing.assert_allclose(np.asarray(out), np.asarray(ref_bf16),
                                   rtol=5e-2, atol=5e-2)
        # Full-f32 reference (semantics check).
        ref_f32 = jax.block_until_ready(ref_basic_block(x, params, stride))
        np.testing.assert_allclose(np.asarray(out), np.asarray(ref_f32),
                                   rtol=5e-2, atol=5e-2)
    print("KERNEL_OK")
</pallas_src>

<mosaic_0001>
module attributes {stable_mosaic.version = 11 : i64} {
  func.func @_affine_res_kernel(%arg0: i32, %arg1: memref<128x128xbf16, #tpu.memory_space<vmem>>, %arg2: memref<1x128xf32, #tpu.memory_space<vmem>>, %arg3: memref<1x128xf32, #tpu.memory_space<vmem>>, %arg4: memref<128x128xbf16, #tpu.memory_space<vmem>>) attributes {dimension_semantics = [#tpu.dimension_semantics<parallel>], iteration_bounds = array<i64: 1>, scalar_prefetch = 0 : i64, scratch_operands = 0 : i64, tpu.core_type = #tpu.core_type<tc>, window_params = [{transform_indices = @transform_0, window_bounds = array<i64: 128, 128>}, {pipeline_mode = #tpu.pipeline_mode<synchronous>, transform_indices = @transform_1, window_bounds = array<i64: 1, 128>}, {pipeline_mode = #tpu.pipeline_mode<synchronous>, transform_indices = @transform_2, window_bounds = array<i64: 1, 128>}, {transform_indices = @transform_3, window_bounds = array<i64: 128, 128>}]} {
    %c0 = arith.constant 0 : index
    %c0_0 = arith.constant 0 : index
    %0 = vector.load %arg1[%c0, %c0_0] : memref<128x128xbf16, #tpu.memory_space<vmem>>, vector<128x128xbf16>
    %1 = arith.extf %0 : vector<128x128xbf16> to vector<128x128xf32>
    %c0_1 = arith.constant 0 : index
    %c0_2 = arith.constant 0 : index
    %2 = vector.load %arg2[%c0_1, %c0_2] : memref<1x128xf32, #tpu.memory_space<vmem>>, vector<1x128xf32>
    %3 = vector.broadcast %2 : vector<1x128xf32> to vector<128x128xf32>
    %4 = arith.mulf %1, %3 : vector<128x128xf32>
    %c0_3 = arith.constant 0 : index
    %c0_4 = arith.constant 0 : index
    %5 = vector.load %arg3[%c0_3, %c0_4] : memref<1x128xf32, #tpu.memory_space<vmem>>, vector<1x128xf32>
    %6 = vector.broadcast %5 : vector<1x128xf32> to vector<128x128xf32>
    %7 = arith.addf %4, %6 : vector<128x128xf32>
    %cst = arith.constant 0.000000e+00 : f32
    %8 = vector.broadcast %cst : f32 to vector<128x128xf32>
    %9 = arith.maximumf %7, %8 : vector<128x128xf32>
    %10 = arith.truncf %9 : vector<128x128xf32> to vector<128x128xbf16>
    %c0_5 = arith.constant 0 : index
    %c0_6 = arith.constant 0 : index
    %11 = vector.load %arg4[%c0_5, %c0_6] : memref<128x128xbf16, #tpu.memory_space<vmem>>, vector<128x128xbf16>
    tpu.vector_store %arg4[%c0_5, %c0_6], %10 {strides = array<i32>} : memref<128x128xbf16, #tpu.memory_space<vmem>>, vector<128x128xbf16>,
    return
  }
  func.func @transform_0(%arg0: i32) -> (i32, i32) {
    %c0_i32 = arith.constant 0 : i32
    %c0_i32_0 = arith.constant 0 : i32
    return %arg0, %c0_i32 : i32, i32
  }
  func.func @transform_1(%arg0: i32) -> (i32, i32) {
    %c0_i32 = arith.constant 0 : i32
    %c0_i32_0 = arith.constant 0 : i32
    %c0_i32_1 = arith.constant 0 : i32
    return %c0_i32, %c0_i32_0 : i32, i32
  }
  func.func @transform_2(%arg0: i32) -> (i32, i32) {
    %c0_i32 = arith.constant 0 : i32
    %c0_i32_0 = arith.constant 0 : i32
    %c0_i32_1 = arith.constant 0 : i32
    return %c0_i32, %c0_i32_0 : i32, i32
  }
  func.func @transform_3(%arg0: i32) -> (i32, i32) {
    %c0_i32 = arith.constant 0 : i32
    %c0_i32_0 = arith.constant 0 : i32
    return %arg0, %c0_i32 : i32, i32
  }
}

module attributes {stable_mosaic.version = 11 : i64} {
  func.func @_conv_stats_kernel(%arg0: i32, %arg1: i32, %arg2: memref<128x128xbf16, #tpu.memory_space<vmem>>, %arg3: memref<128x128xbf16, #tpu.memory_space<vmem>>, %arg4: memref<128x128xbf16, #tpu.memory_space<vmem>>, %arg5: memref<1x1x128xf32, #tpu.memory_space<vmem>>, %arg6: memref<1x1x128xf32, #tpu.memory_space<vmem>>, %arg7: memref<128x128xf32, #tpu.memory_space<vmem>>) attributes {dimension_semantics = [#tpu.dimension_semantics<parallel>, #tpu.dimension_semantics<arbitrary>], iteration_bounds = array<i64: 1, 1>, scalar_prefetch = 0 : i64, scratch_operands = 1 : i64, tpu.core_type = #tpu.core_type<tc>, window_params = [{transform_indices = @transform_0, window_bounds = array<i64: 128, 128>}, {pipeline_mode = #tpu.pipeline_mode<synchronous>, transform_indices = @transform_1, window_bounds = array<i64: 128, 128>}, {transform_indices = @transform_2, window_bounds = array<i64: 128, 128>}, {transform_indices = @transform_3, window_bounds = array<i64: 1, 1, 128>}, {transform_indices = @transform_4, window_bounds = array<i64: 1, 1, 128>}]} {
    %c0_i32 = arith.constant 0 : i32
    %0 = arith.cmpi eq, %arg1, %c0_i32 : i32
    %1 = arith.extui %0 : i1 to i32
    %c0_i32_0 = arith.constant 0 : i32
    %2 = arith.cmpi ne, %1, %c0_i32_0 : i32
    scf.if %2 {
      %cst_9 = arith.constant 0.000000e+00 : f32
      %15 = vector.broadcast %cst_9 : f32 to vector<128x128xf32>
      %c0_10 = arith.constant 0 : index
      %c0_11 = arith.constant 0 : index
      %16 = vector.load %arg7[%c0_10, %c0_11] : memref<128x128xf32, #tpu.memory_space<vmem>>, vector<128x128xf32>
      tpu.vector_store %arg7[%c0_10, %c0_11], %15 {strides = array<i32>} : memref<128x128xf32, #tpu.memory_space<vmem>>, vector<128x128xf32>,
    } else {
    }
    %c128_i32 = arith.constant 128 : i32
    %3 = arith.muli %arg1, %c128_i32 : i32
    %4 = tpu.assume_multiple %3, 128 : i32
    %c0 = arith.constant 0 : index
    %c0_1 = arith.constant 0 : index
    %5 = vector.load %arg7[%c0, %c0_1] : memref<128x128xf32, #tpu.memory_space<vmem>>, vector<128x128xf32>
    %c0_2 = arith.constant 0 : index
    %c0_3 = arith.constant 0 : index
    %6 = vector.load %arg2[%c0_2, %c0_3] : memref<128x128xbf16, #tpu.memory_space<vmem>>, vector<128x128xbf16>
    %7 = arith.index_cast %4 : i32 to index
    %c0_4 = arith.constant 0 : index
    %8 = vector.load %arg3[%7, %c0_4] : memref<128x128xbf16, #tpu.memory_space<vmem>>, vector<128x128xbf16>
    %cst = arith.constant dense<0.000000e+00> : vector<128x128xf32>
    %9 = tpu.matmul %6, %8, %cst {dimension_numbers = #tpu.dot_dimension_numbers<[1], [0], [0], [1], [0, 0, 1, 1], [], []>} : vector<128x128xbf16>, vector<128x128xbf16>, vector<128x128xf32> -> vector<128x128xf32>
    %10 = arith.addf %5, %9 : vector<128x128xf32>
    %c0_5 = arith.constant 0 : index
    %c0_6 = arith.constant 0 : index
    %11 = vector.load %arg7[%c0_5, %c0_6] : memref<128x128xf32, #tpu.memory_space<vmem>>, vector<128x128xf32>
    tpu.vector_store %arg7[%c0_5, %c0_6], %10 {strides = array<i32>} : memref<128x128xf32, #tpu.memory_space<vmem>>, vector<128x128xf32>,
    %c0_i32_7 = arith.constant 0 : i32
    %12 = arith.cmpi eq, %arg1, %c0_i32_7 : i32
    %13 = arith.extui %12 : i1 to i32
    %c0_i32_8 = arith.constant 0 : i32
    %14 = arith.cmpi ne, %13, %c0_i32_8 : i32
    scf.if %14 {
      %c0_9 = arith.constant 0 : index
      %c0_10 = arith.constant 0 : index
      %15 = vector.load %arg7[%c0_9, %c0_10] : memref<128x128xf32, #tpu.memory_space<vmem>>, vector<128x128xf32>
      %16 = arith.truncf %15 : vector<128x128xf32> to vector<128x128xbf16>
      %c0_11 = arith.constant 0 : index
      %c0_12 = arith.constant 0 : index
      %17 = vector.load %arg4[%c0_11, %c0_12] : memref<128x128xbf16, #tpu.memory_space<vmem>>, vector<128x128xbf16>
      tpu.vector_store %arg4[%c0_11, %c0_12], %16 {strides = array<i32>} : memref<128x128xbf16, #tpu.memory_space<vmem>>, vector<128x128xbf16>,
      %cst_13 = arith.constant dense<0.000000e+00> : vector<128xf32>
      %18 = vector.multi_reduction <add>, %15, %cst_13 [0] : vector<128x128xf32> to vector<128xf32>
      %19 = vector.shape_cast %18 : vector<128xf32> to vector<1x128xf32>
      %c0_14 = arith.constant 0 : index
      %c0_15 = arith.constant 0 : index
      %c0_16 = arith.constant 0 : index
      %20 = vector.load %arg5[%c0_14, %c0_15, %c0_16] : memref<1x1x128xf32, #tpu.memory_space<vmem>>, vector<1x1x128xf32>
      %21 = vector.shape_cast %20 : vector<1x1x128xf32> to vector<1x128xf32>
      %22 = vector.shape_cast %19 : vector<1x128xf32> to vector<1x1x128xf32>
      tpu.vector_store %arg5[%c0_14, %c0_15, %c0_16], %22 {strides = array<i32>} : memref<1x1x128xf32, #tpu.memory_space<vmem>>, vector<1x1x128xf32>,
      %23 = arith.mulf %15, %15 : vector<128x128xf32>
      %cst_17 = arith.constant dense<0.000000e+00> : vector<128xf32>
      %24 = vector.multi_reduction <add>, %23, %cst_17 [0] : vector<128x128xf32> to vector<128xf32>
      %25 = vector.shape_cast %24 : vector<128xf32> to vector<1x128xf32>
      %c0_18 = arith.constant 0 : index
      %c0_19 = arith.constant 0 : index
      %c0_20 = arith.constant 0 : index
      %26 = vector.load %arg6[%c0_18, %c0_19, %c0_20] : memref<1x1x128xf32, #tpu.memory_space<vmem>>, vector<1x1x128xf32>
      %27 = vector.shape_cast %26 : vector<1x1x128xf32> to vector<1x128xf32>
      %28 = vector.shape_cast %25 : vector<1x128xf32> to vector<1x1x128xf32>
      tpu.vector_store %arg6[%c0_18, %c0_19, %c0_20], %28 {strides = array<i32>} : memref<1x1x128xf32, #tpu.memory_space<vmem>>, vector<1x1x128xf32>,
    } else {
    }
    return
  }
  func.func @transform_0(%arg0: i32, %arg1: i32) -> (i32, i32) {
    %c0_i32 = arith.constant 0 : i32
    return %arg0, %arg1 : i32, i32
  }
  func.func @transform_1(%arg0: i32, %arg1: i32) -> (i32, i32) {
    %c0_i32 = arith.constant 0 : i32
    %c0_i32_0 = arith.constant 0 : i32
    %c0_i32_1 = arith.constant 0 : i32
    return %c0_i32, %c0_i32_0 : i32, i32
  }
  func.func @transform_2(%arg0: i32, %arg1: i32) -> (i32, i32) {
    %c0_i32 = arith.constant 0 : i32
    %c0_i32_0 = arith.constant 0 : i32
    return %arg0, %c0_i32 : i32, i32
  }
  func.func @transform_3(%arg0: i32, %arg1: i32) -> (i32, i32, i32) {
    %c0_i32 = arith.constant 0 : i32
    %c0_i32_0 = arith.constant 0 : i32
    %c0_i32_1 = arith.constant 0 : i32
    return %arg0, %c0_i32, %c0_i32_0 : i32, i32, i32
  }
  func.func @transform_4(%arg0: i32, %arg1: i32) -> (i32, i32, i32) {
    %c0_i32 = arith.constant 0 : i32
    %c0_i32_0 = arith.constant 0 : i32
    %c0_i32_1 = arith.constant 0 : i32
    return %arg0, %c0_i32, %c0_i32_0 : i32, i32, i32
  }
}

module attributes {stable_mosaic.version = 11 : i64} {
  func.func @_affine_res_kernel(%arg0: i32, %arg1: memref<128x128xbf16, #tpu.memory_space<vmem>>, %arg2: memref<1x128xf32, #tpu.memory_space<vmem>>, %arg3: memref<1x128xf32, #tpu.memory_space<vmem>>, %arg4: memref<128x128xbf16, #tpu.memory_space<vmem>>, %arg5: memref<1x128xf32, #tpu.memory_space<vmem>>, %arg6: memref<1x128xf32, #tpu.memory_space<vmem>>, %arg7: memref<128x128xf32, #tpu.memory_space<vmem>>) attributes {dimension_semantics = [#tpu.dimension_semantics<parallel>], iteration_bounds = array<i64: 1>, scalar_prefetch = 0 : i64, scratch_operands = 0 : i64, tpu.core_type = #tpu.core_type<tc>, window_params = [{transform_indices = @transform_0, window_bounds = array<i64: 128, 128>}, {pipeline_mode = #tpu.pipeline_mode<synchronous>, transform_indices = @transform_1, window_bounds = array<i64: 1, 128>}, {pipeline_mode = #tpu.pipeline_mode<synchronous>, transform_indices = @transform_2, window_bounds = array<i64: 1, 128>}, {transform_indices = @transform_3, window_bounds = array<i64: 128, 128>}, {pipeline_mode = #tpu.pipeline_mode<synchronous>, transform_indices = @transform_4, window_bounds = array<i64: 1, 128>}, {pipeline_mode = #tpu.pipeline_mode<synchronous>, transform_indices = @transform_5, window_bounds = array<i64: 1, 128>}, {transform_indices = @transform_6, window_bounds = array<i64: 128, 128>}]} {
    %c0 = arith.constant 0 : index
    %c0_0 = arith.constant 0 : index
    %0 = vector.load %arg1[%c0, %c0_0] : memref<128x128xbf16, #tpu.memory_space<vmem>>, vector<128x128xbf16>
    %1 = arith.extf %0 : vector<128x128xbf16> to vector<128x128xf32>
    %c0_1 = arith.constant 0 : index
    %c0_2 = arith.constant 0 : index
    %2 = vector.load %arg2[%c0_1, %c0_2] : memref<1x128xf32, #tpu.memory_space<vmem>>, vector<1x128xf32>
    %3 = vector.broadcast %2 : vector<1x128xf32> to vector<128x128xf32>
    %4 = arith.mulf %1, %3 : vector<128x128xf32>
    %c0_3 = arith.constant 0 : index
    %c0_4 = arith.constant 0 : index
    %5 = vector.load %arg3[%c0_3, %c0_4] : memref<1x128xf32, #tpu.memory_space<vmem>>, vector<1x128xf32>
    %6 = vector.broadcast %5 : vector<1x128xf32> to vector<128x128xf32>
    %7 = arith.addf %4, %6 : vector<128x128xf32>
    %c0_5 = arith.constant 0 : index
    %c0_6 = arith.constant 0 : index
    %8 = vector.load %arg4[%c0_5, %c0_6] : memref<128x128xbf16, #tpu.memory_space<vmem>>, vector<128x128xbf16>
    %9 = arith.extf %8 : vector<128x128xbf16> to vector<128x128xf32>
    %c0_7 = arith.constant 0 : index
    %c0_8 = arith.constant 0 : index
    %10 = vector.load %arg5[%c0_7, %c0_8] : memref<1x128xf32, #tpu.memory_space<vmem>>, vector<1x128xf32>
    %11 = vector.broadcast %10 : vector<1x128xf32> to vector<128x128xf32>
    %12 = arith.mulf %9, %11 : vector<128x128xf32>
    %c0_9 = arith.constant 0 : index
    %c0_10 = arith.constant 0 : index
    %13 = vector.load %arg6[%c0_9, %c0_10] : memref<1x128xf32, #tpu.memory_space<vmem>>, vector<1x128xf32>
    %14 = vector.broadcast %13 : vector<1x128xf32> to vector<128x128xf32>
    %15 = arith.addf %12, %14 : vector<128x128xf32>
    %16 = arith.addf %7, %15 : vector<128x128xf32>
    %cst = arith.constant 0.000000e+00 : f32
    %17 = vector.broadcast %cst : f32 to vector<128x128xf32>
    %18 = arith.maximumf %16, %17 : vector<128x128xf32>
    %c0_11 = arith.constant 0 : index
    %c0_12 = arith.constant 0 : index
    %19 = vector.load %arg7[%c0_11, %c0_12] : memref<128x128xf32, #tpu.memory_space<vmem>>, vector<128x128xf32>
    tpu.vector_store %arg7[%c0_11, %c0_12], %18 {strides = array<i32>} : memref<128x128xf32, #tpu.memory_space<vmem>>, vector<128x128xf32>,
    return
  }
  func.func @transform_0(%arg0: i32) -> (i32, i32) {
    %c0_i32 = arith.constant 0 : i32
    %c0_i32_0 = arith.constant 0 : i32
    return %arg0, %c0_i32 : i32, i32
  }
  func.func @transform_1(%arg0: i32) -> (i32, i32) {
    %c0_i32 = arith.constant 0 : i32
    %c0_i32_0 = arith.constant 0 : i32
    %c0_i32_1 = arith.constant 0 : i32
    return %c0_i32, %c0_i32_0 : i32, i32
  }
  func.func @transform_2(%arg0: i32) -> (i32, i32) {
    %c0_i32 = arith.constant 0 : i32
    %c0_i32_0 = arith.constant 0 : i32
    %c0_i32_1 = arith.constant 0 : i32
    return %c0_i32, %c0_i32_0 : i32, i32
  }
  func.func @transform_3(%arg0: i32) -> (i32, i32) {
    %c0_i32 = arith.constant 0 : i32
    %c0_i32_0 = arith.constant 0 : i32
    return %arg0, %c0_i32 : i32, i32
  }
  func.func @transform_4(%arg0: i32) -> (i32, i32) {
    %c0_i32 = arith.constant 0 : i32
    %c0_i32_0 = arith.constant 0 : i32
    %c0_i32_1 = arith.constant 0 : i32
    return %c0_i32, %c0_i32_0 : i32, i32
  }
  func.func @transform_5(%arg0: i32) -> (i32, i32) {
    %c0_i32 = arith.constant 0 : i32
    %c0_i32_0 = arith.constant 0 : i32
    %c0_i32_1 = arith.constant 0 : i32
    return %c0_i32, %c0_i32_0 : i32, i32
  }
  func.func @transform_6(%arg0: i32) -> (i32, i32) {
    %c0_i32 = arith.constant 0 : i32
    %c0_i32_0 = arith.constant 0 : i32
    return %arg0, %c0_i32 : i32, i32
  }
}

</mosaic_0001>

<bundles_post_ra>
// kernel: basic_block_forward.5
= control target key start
LH: loop header
LB: loop body
LE: loop exit
PB: predicated region body
PF: predicated region fallthrough
CT: control target
= control target key end

     0   :  { %s336_s0 = inlined_call_operand.vmem [shape: bf16[128,128], index: 0, kind: input, shape index: {}]   ;;  %s337_s1 = inlined_call_operand.vmem [shape: f32[1,128], index: 1, kind: input, shape index: {}]   ;;  %s338_s2 = inlined_call_operand.vmem [shape: f32[1,128], index: 2, kind: input, shape index: {}]   ;;  %s339_s3 = inlined_call_operand.vmem [shape: bf16[128,128], index: 3, kind: output, shape index: {}]  }
   0x1   :  { %v139_v0 = vld [vmem:[%s336_s0] sm:$0xff]   ;;  %v210_v5 = vld [vmem:[%s336_s0 + $0x8] sm:$0xff]   ;;  %v211_v8 = vld [vmem:[%s336_s0 + $0x10] sm:$0xff]  }
   0x2   :  { %v252_v1 = vld [vmem:[%s337_s1] ss:$0 sm:$0xff]  ;;  %v140_v2 = vunpack.c.l.bf16 %v139_v0  ;;  %v141_v3 = vunpack.c.h.bf16 %v139_v0  ;;  %v144_v6 = vunpack.c.l.bf16 %v210_v5  ;;  %v145_v7 = vunpack.c.h.bf16 %v210_v5  ;;  %v212_v9 = vld [vmem:[%s336_s0 + $0x18] sm:$0xff]   ;;  %v214_v35 = vld [vmem:[%s336_s0 + $0x28] sm:$0xff]  }
   0x3   :  { %v257_v4 = vld [vmem:[%s338_s2] ss:$0 sm:$0xff]  ;;  %v148_v12 = vunpack.c.l.bf16 %v211_v8  ;;  %v149_v13 = vunpack.c.h.bf16 %v211_v8  ;;  %v152_v16 = vunpack.c.l.bf16 %v212_v9  ;;  %v153_v17 = vunpack.c.h.bf16 %v212_v9  ;;  %v215_v40 = vld [vmem:[%s336_s0 + $0x30] sm:$0xff]   ;;  %v216_v45 = vld [vmem:[%s336_s0 + $0x38] sm:$0xff]  }
   0x4   :  { %v50_v10 = vmul.f32 %v252_v1, %v140_v2  ;;  %v51_v11 = vmul.f32 %v252_v1, %v141_v3  ;;  %v52_v14 = vmul.f32 %v252_v1, %v144_v6  ;;  %v53_v15 = vmul.f32 %v252_v1, %v145_v7  ;;  %v213_v26 = vld [vmem:[%s336_s0 + $0x20] sm:$0xff]  }
   0x5   :  { %v54_v20 = vmul.f32 %v252_v1, %v148_v12  ;;  %v55_v21 = vmul.f32 %v252_v1, %v149_v13  ;;  %v56_v24 = vmul.f32 %v252_v1, %v152_v16  ;;  %v57_v25 = vmul.f32 %v252_v1, %v153_v17 }
   0x6   :  { %v70_v18 = vadd.f32 %v257_v4, %v50_v10  ;;  %v71_v19 = vadd.f32 %v257_v4, %v51_v11  ;;  %v72_v22 = vadd.f32 %v257_v4, %v52_v14  ;;  %v73_v23 = vadd.f32 %v257_v4, %v53_v15 }
   0x7   :  { %v74_v29 = vadd.f32 %v257_v4, %v54_v20  ;;  %v75_v30 = vadd.f32 %v257_v4, %v55_v21  ;;  %v76_v33 = vadd.f32 %v257_v4, %v56_v24  ;;  %v77_v34 = vadd.f32 %v257_v4, %v57_v25 }
   0x8   :  { %v86_v27 = vmax.f32 %v70_v18, 0.0  ;;  %v87_v28 = vmax.f32 %v71_v19, 0.0  ;;  %v88_v31 = vmax.f32 %v72_v22, 0.0  ;;  %v89_v32 = vmax.f32 %v73_v23, 0.0 }
   0x9   :  { %v90_v37 = vmax.f32 %v74_v29, 0.0  ;;  %v91_v38 = vmax.f32 %v75_v30, 0.0  ;;  %v156_v39 = vunpack.c.l.bf16 %v213_v26  ;;  %v92_v42 = vmax.f32 %v76_v33, 0.0 }
   0xa   :  { %v173_v36 = vpack.c.bf16 %v87_v28, %v86_v27  ;;  %v178_v41 = vpack.c.bf16 %v89_v32, %v88_v31  ;;  %v93_v43 = vmax.f32 %v77_v34, 0.0  ;;  %v157_v44 = vunpack.c.h.bf16 %v213_v26 }
   0xb   :  { %v183_v46 = vpack.c.bf16 %v91_v38, %v90_v37  ;;  %v58_v47 = vmul.f32 %v252_v1, %v156_v39  ;;  %v160_v48 = vunpack.c.l.bf16 %v214_v35  ;;  %v161_v49 = vunpack.c.h.bf16 %v214_v35 }
   0xc   :  { %174 = vst [vmem:[%s339_s3] sm:$0xff] %v173_v36   ;;  %v188_v50 = vpack.c.bf16 %v93_v43, %v92_v42  ;;  %v59_v51 = vmul.f32 %v252_v1, %v157_v44  ;;  %v164_v52 = vunpack.c.l.bf16 %v215_v40  ;;  %v165_v53 = vunpack.c.h.bf16 %v215_v40 }
   0xd   :  { %217 = vst [vmem:[%s339_s3 + $0x8] sm:$0xff] %v178_v41   ;;  %v78_v54 = vadd.f32 %v257_v4, %v58_v47  ;;  %v60_v55 = vmul.f32 %v252_v1, %v160_v48  ;;  %v61_v56 = vmul.f32 %v252_v1, %v161_v49  ;;  %v168_v57 = vunpack.c.l.bf16 %v216_v45 }
   0xe   :  { %218 = vst [vmem:[%s339_s3 + $0x10] sm:$0xff] %v183_v46   ;;  %v79_v58 = vadd.f32 %v257_v4, %v59_v51  ;;  %v62_v59 = vmul.f32 %v252_v1, %v164_v52  ;;  %v63_v60 = vmul.f32 %v252_v1, %v165_v53  ;;  %v169_v61 = vunpack.c.h.bf16 %v216_v45 }
   0xf   :  { %219 = vst [vmem:[%s339_s3 + $0x18] sm:$0xff] %v188_v50   ;;  %v94_v62 = vmax.f32 %v78_v54, 0.0  ;;  %v80_v63 = vadd.f32 %v257_v4, %v60_v55  ;;  %v81_v0 = vadd.f32 %v257_v4, %v61_v56  ;;  %v64_v2 = vmul.f32 %v252_v1, %v168_v57 }
  0x10   :  { %v95_v3 = vmax.f32 %v79_v58, 0.0  ;;  %v82_v5 = vadd.f32 %v257_v4, %v62_v59  ;;  %v83_v6 = vadd.f32 %v257_v4, %v63_v60  ;;  %v65_v7 = vmul.f32 %v252_v1, %v169_v61 }
  0x11   :  { %v96_v8 = vmax.f32 %v80_v63, 0.0  ;;  %v97_v9 = vmax.f32 %v81_v0, 0.0  ;;  %v84_v10 = vadd.f32 %v257_v4, %v64_v2 }
  0x12   :  { %v193_v11 = vpack.c.bf16 %v95_v3, %v94_v62  ;;  %v98_v12 = vmax.f32 %v82_v5, 0.0  ;;  %v99_v13 = vmax.f32 %v83_v6, 0.0  ;;  %v85_v14 = vadd.f32 %v257_v4, %v65_v7 }
  0x13   :  { %v198_v15 = vpack.c.bf16 %v97_v9, %v96_v8  ;;  %v100_v16 = vmax.f32 %v84_v10, 0.0 }
  0x14   :  { %220 = vst [vmem:[%s339_s3 + $0x20] sm:$0xff] %v193_v11   ;;  %v203_v17 = vpack.c.bf16 %v99_v13, %v98_v12  ;;  %v101_v18 = vmax.f32 %v85_v14, 0.0 }
  0x15   :  { %221 = vst [vmem:[%s339_s3 + $0x28] sm:$0xff] %v198_v15  }
  0x16   :  { %222 = vst [vmem:[%s339_s3 + $0x30] sm:$0xff] %v203_v17   ;;  %v208_v1 = vpack.c.bf16 %v101_v18, %v100_v16 }
  0x18   :  { %223 = vst [vmem:[%s339_s3 + $0x38] sm:$0xff] %v208_v1  }

// kernel: basic_block_forward.4
= control target key start
LH: loop header
LB: loop body
LE: loop exit
PB: predicated region body
PF: predicated region fallthrough
CT: control target
= control target key end

     0   :  { %s649_s1 = inlined_call_operand.vmem [shape: bf16[128,128], index: 1, kind: input, shape index: {}]   ;;  %s650_s0 = inlined_call_operand.vmem [shape: bf16[128,128], index: 0, kind: input, shape index: {}]   ;;  %s651_s2 = inlined_call_operand.vmem [shape: bf16[128,128], index: 2, kind: output, shape index: {0}]   ;;  %s652_s3 = inlined_call_operand.vmem [shape: f32[1,1,128], index: 3, kind: output, shape index: {1}]   ;;  %s653_s4 = inlined_call_operand.vmem [shape: f32[1,1,128], index: 4, kind: output, shape index: {2}]  }
   0x1   :  { %v468_v0 = vld [vmem:[%s649_s1 + $0x38] sm:$0xff]  ;;  %v467_v1 = vld [vmem:[%s649_s1 + $0x30] sm:$0xff]  ;;  %v466_v2 = vld [vmem:[%s649_s1 + $0x28] sm:$0xff] }
   0x2   :  { %183 = vmatpush.bf16.msra.mxu0 %v468_v0  ;;  %516 = vmatpush.bf16.msra.mxu1 %v468_v0  ;;  %v465_v3 = vld [vmem:[%s649_s1 + $0x20] sm:$0xff]  ;;  %v464_v4 = vld [vmem:[%s649_s1 + $0x18] sm:$0xff]  ;;  %v463_v5 = vld [vmem:[%s649_s1 + $0x10] sm:$0xff] }
   0x3   :  { %517 = vmatpush.bf16.msra.mxu2 %v468_v0  ;;  %518 = vmatpush.bf16.msra.mxu3 %v468_v0  ;;  %v462_v6 = vld [vmem:[%s649_s1 + $0x8] sm:$0xff]  ;;  %v461_v7 = vld [vmem:[%s649_s1] sm:$0xff]  ;;  %v455_v9 = vld [vmem:[%s650_s0 + $0x10] sm:$0xff] }
   0x4   :  { %v453_v8 = vld [vmem:[%s650_s0] sm:$0xff]  ;;  %v459_v11 = vld [vmem:[%s650_s0 + $0x30] sm:$0xff]  ;;  %v454_v12 = vld [vmem:[%s650_s0 + $0x8] sm:$0xff] }
   0x5   :  { %v457_v10 = vld [vmem:[%s650_s0 + $0x20] sm:$0xff]  ;;  %v456_v13 = vld [vmem:[%s650_s0 + $0x18] sm:$0xff]  ;;  %v458_v14 = vld [vmem:[%s650_s0 + $0x28] sm:$0xff] }
   0x6   :  { %184 = vmatpush.bf16.msra.mxu0 %v467_v1  ;;  %519 = vmatpush.bf16.msra.mxu1 %v467_v1  ;;  %v460_v15 = vld [vmem:[%s650_s0 + $0x38] sm:$0xff] }
   0x7   :  { %520 = vmatpush.bf16.msra.mxu2 %v467_v1  ;;  %521 = vmatpush.bf16.msra.mxu3 %v467_v1 }
   0xa   :  { %185 = vmatpush.bf16.msra.mxu0 %v466_v2  ;;  %522 = vmatpush.bf16.msra.mxu1 %v466_v2 }
   0xb   :  { %523 = vmatpush.bf16.msra.mxu2 %v466_v2  ;;  %524 = vmatpush.bf16.msra.mxu3 %v466_v2 }
   0xe   :  { %186 = vmatpush.bf16.msra.mxu0 %v465_v3  ;;  %525 = vmatpush.bf16.msra.mxu1 %v465_v3 }
   0xf   :  { %526 = vmatpush.bf16.msra.mxu2 %v465_v3  ;;  %527 = vmatpush.bf16.msra.mxu3 %v465_v3 }
  0x12   :  { %187 = vmatpush.bf16.msra.mxu0 %v464_v4  ;;  %528 = vmatpush.bf16.msra.mxu1 %v464_v4 }
  0x13   :  { %529 = vmatpush.bf16.msra.mxu2 %v464_v4  ;;  %530 = vmatpush.bf16.msra.mxu3 %v464_v4 }
  0x16   :  { %188 = vmatpush.bf16.msra.mxu0 %v463_v5  ;;  %531 = vmatpush.bf16.msra.mxu1 %v463_v5 }
  0x17   :  { %532 = vmatpush.bf16.msra.mxu2 %v463_v5  ;;  %533 = vmatpush.bf16.msra.mxu3 %v463_v5 }
  0x1a   :  { %189 = vmatpush.bf16.msra.mxu0 %v462_v6  ;;  %534 = vmatpush.bf16.msra.mxu1 %v462_v6 }
  0x1b   :  { %535 = vmatpush.bf16.msra.mxu2 %v462_v6  ;;  %536 = vmatpush.bf16.msra.mxu3 %v462_v6 }
  0x1e   :  { %190 = vmatpush.bf16.msra.mxu0 %v461_v7  ;;  %537 = vmatpush.bf16.msra.mxu1 %v461_v7 }
  0x1f   :  { %538 = vmatpush.bf16.msra.mxu2 %v461_v7  ;;  %539 = vmatpush.bf16.msra.mxu3 %v461_v7 }
  0x21   :  { %191 = vmatmul.bf16.vlgmr.msra.gmra.mxu0 %v453_v8  ;;  %201 = vmatmul.bf16.vlgmr.msra.gmra.mxu1 %v455_v9 }
  0x22   :  { %211 = vmatmul.bf16.vlgmr.msra.gmra.mxu2 %v457_v10  ;;  %221 = vmatmul.bf16.vlgmr.msra.gmra.mxu3 %v459_v11 }
  0x31   :  { %196 = vmatmul.bf16.gmra.mxu0 %v454_v12  ;;  %206 = vmatmul.bf16.gmra.mxu1 %v456_v13 }
  0x32   :  { %216 = vmatmul.bf16.gmra.mxu2 %v458_v14  ;;  %226 = vmatmul.bf16.gmra.mxu3 %v460_v15 }
  0x9e   :  { %v192_v16 = vpop.f32.mrf.mxu0  ;;  %v202_v17 = vpop.f32.mrf.mxu1 }
  0x9f   :  { %v337_v31 = vmul.f32 %v192_v16, %v192_v16  ;;  %v341_v45 = vmul.f32 %v202_v17, %v202_v17 }
  0xa5   :  { %v212_v18 = vpop.f32.mrf.mxu2  ;;  %v613_v19 = vpop.f32.mrf.mxu3 }
  0xa6   :  { %v194_v20 = vpop.f32.mrf.mxu0  ;;  %v204_v21 = vpop.f32.mrf.mxu1  ;;  %v345_v61 = vmul.f32 %v212_v18, %v212_v18  ;;  %v349_v9 = vmul.f32 %v613_v19, %v613_v19 }
  0xa7   :  { %v472_v22 = vpack.c.bf16 %v194_v20, %v192_v16  ;;  %v482_v23 = vpack.c.bf16 %v204_v21, %v202_v17  ;;  %v338_v30 = vmul.f32 %v194_v20, %v194_v20  ;;  %v315_v33 = vadd.f32 %v194_v20, %v192_v16 }
  0xa8   :  { %v342_v48 = vmul.f32 %v204_v21, %v204_v21 }
  0xa9   :  { %473 = vst [vmem:[%s651_s2] sm:$0xff] %v472_v22   ;;  %v353_v34 = vadd.f32 %v338_v30, %v337_v31 }
  0xaa   :  { %510 = vst [vmem:[%s651_s2 + $0x10] sm:$0xff] %v482_v23  }
  0xad   :  { %v214_v24 = vpop.f32.mrf.mxu2  ;;  %v224_v25 = vpop.f32.mrf.mxu3 }
  0xae   :  { %v197_v26 = vpop.f32.mrf.mxu0  ;;  %v207_v27 = vpop.f32.mrf.mxu1  ;;  %v492_v28 = vpack.c.bf16 %v214_v24, %v212_v18  ;;  %v502_v29 = vpack.c.bf16 %v224_v25, %v613_v19  ;;  %v346_v0 = vmul.f32 %v214_v24, %v214_v24  ;;  %v350_v12 = vmul.f32 %v224_v25, %v224_v25 }
  0xaf   :  { %v339_v32 = vmul.f32 %v197_v26, %v197_v26  ;;  %v316_v35 = vadd.f32 %v315_v33, %v197_v26  ;;  %v343_v51 = vmul.f32 %v207_v27, %v207_v27 }
  0xb0   :  { %512 = vst [vmem:[%s651_s2 + $0x20] sm:$0xff] %v492_v28  }
  0xb1   :  { %514 = vst [vmem:[%s651_s2 + $0x30] sm:$0xff] %v502_v29   ;;  %v354_v38 = vadd.f32 %v353_v34, %v339_v32 }
  0xb5   :  { %v217_v36 = vpop.f32.mrf.mxu2  ;;  %v227_v37 = vpop.f32.mrf.mxu3 }
  0xb6   :  { %v199_v39 = vpop.f32.mrf.mxu0  ;;  %v209_v40 = vpop.f32.mrf.mxu1  ;;  %v347_v4 = vmul.f32 %v217_v36, %v217_v36  ;;  %v351_v16 = vmul.f32 %v227_v37, %v227_v37 }
  0xb7   :  { %v477_v41 = vpack.c.bf16 %v199_v39, %v197_v26  ;;  %v317_v42 = vadd.f32 %v316_v35, %v199_v39  ;;  %v340_v43 = vmul.f32 %v199_v39, %v199_v39  ;;  %v487_v44 = vpack.c.bf16 %v209_v40, %v207_v27 }
  0xb8   :  { %v344_v59 = vmul.f32 %v209_v40, %v209_v40 }
  0xb9   :  { %509 = vst [vmem:[%s651_s2 + $0x8] sm:$0xff] %v477_v41   ;;  %v318_v46 = vadd.f32 %v317_v42, %v202_v17  ;;  %v355_v47 = vadd.f32 %v354_v38, %v340_v43 }
  0xba   :  { %511 = vst [vmem:[%s651_s2 + $0x18] sm:$0xff] %v487_v44  }
  0xbb   :  { %v356_v49 = vadd.f32 %v355_v47, %v341_v45  ;;  %v319_v50 = vadd.f32 %v318_v46, %v204_v21 }
  0xbd   :  { %v320_v52 = vadd.f32 %v319_v50, %v207_v27  ;;  %v357_v53 = vadd.f32 %v356_v49, %v342_v48  ;;  %v219_v54 = vpop.f32.mrf.mxu2  ;;  %v229_v55 = vpop.f32.mrf.mxu3 }
  0xbe   :  { %v497_v56 = vpack.c.bf16 %v219_v54, %v217_v36  ;;  %v507_v57 = vpack.c.bf16 %v229_v55, %v227_v37  ;;  %v348_v8 = vmul.f32 %v219_v54, %v219_v54  ;;  %v352_v21 = vmul.f32 %v229_v55, %v229_v55 }
  0xbf   :  { %v321_v58 = vadd.f32 %v320_v52, %v209_v40  ;;  %v358_v60 = vadd.f32 %v357_v53, %v343_v51 }
  0xc0   :  { %513 = vst [vmem:[%s651_s2 + $0x28] sm:$0xff] %v497_v56  }
  0xc1   :  { %v322_v62 = vadd.f32 %v321_v58, %v212_v18  ;;  %v359_v63 = vadd.f32 %v358_v60, %v344_v59  ;;  %515 = vst [vmem:[%s651_s2 + $0x38] sm:$0xff] %v507_v57  }
  0xc3   :  { %v360_v1 = vadd.f32 %v359_v63, %v345_v61  ;;  %v323_v2 = vadd.f32 %v322_v62, %v214_v24 }
  0xc5   :  { %v324_v3 = vadd.f32 %v323_v2, %v217_v36  ;;  %v361_v5 = vadd.f32 %v360_v1, %v346_v0 }
  0xc7   :  { %v362_v6 = vadd.f32 %v361_v5, %v347_v4  ;;  %v325_v7 = vadd.f32 %v324_v3, %v219_v54 }
  0xc9   :  { %v326_v10 = vadd.f32 %v325_v7, %v613_v19  ;;  %v363_v11 = vadd.f32 %v362_v6, %v348_v8 }
  0xcb   :  { %v364_v13 = vadd.f32 %v363_v11, %v349_v9  ;;  %v327_v14 = vadd.f32 %v326_v10, %v224_v25 }
  0xcd   :  { %v328_v15 = vadd.f32 %v327_v14, %v227_v37  ;;  %v365_v17 = vadd.f32 %v364_v13, %v350_v12 }
  0xcf   :  { %v366_v18 = vadd.f32 %v365_v17, %v351_v16  ;;  %v329_v20 = vadd.f32 %v328_v15, %v229_v55 }
  0xd1   :  { %v330_v22 = vrot.slane %v329_v20, 4  ;;  %v367_v23 = vadd.f32 %v366_v18, %v352_v21 }
  0xd3   :  { %v331_v24 = vadd.f32 %v330_v22, %v329_v20  ;;  %v368_v26 = vrot.slane %v367_v23, 4 }
  0xd5   :  { %v332_v27 = vrot.slane %v331_v24, 2  ;;  %v369_v28 = vadd.f32 %v368_v26, %v367_v23 }
  0xd7   :  { %v333_v29 = vadd.f32 %v332_v27, %v331_v24  ;;  %v370_v30 = vrot.slane %v369_v28, 2 }
  0xd9   :  { %v334_v31 = vrot.slane %v333_v29, 1  ;;  %v371_v19 = vadd.f32 %v370_v30, %v369_v28 }
  0xdb   :  { %v335_v32 = vadd.f32 %v334_v31, %v333_v29  ;;  %v372_v33 = vrot.slane %v371_v19, 1 }
  0xdd   :  { %336 = vst [vmem:[%s652_s3] sm:$0x1] %v335_v32  ;;  %v373_v25 = vadd.f32 %v372_v33, %v371_v19 }
  0xdf   :  { %374 = vst [vmem:[%s653_s4] sm:$0x1] %v373_v25 }

// kernel: basic_block_forward.7
= control target key start
LH: loop header
LB: loop body
LE: loop exit
PB: predicated region body
PF: predicated region fallthrough
CT: control target
= control target key end

     0   :  { %s516_s0 = inlined_call_operand.vmem [shape: bf16[128,128], index: 0, kind: input, shape index: {}]   ;;  %s517_s1 = inlined_call_operand.vmem [shape: f32[1,128], index: 1, kind: input, shape index: {}]   ;;  %s518_s2 = inlined_call_operand.vmem [shape: f32[1,128], index: 2, kind: input, shape index: {}]   ;;  %s519_s3 = inlined_call_operand.vmem [shape: bf16[128,128], index: 3, kind: input, shape index: {}]   ;;  %s520_s4 = inlined_call_operand.vmem [shape: f32[1,128], index: 4, kind: input, shape index: {}]   ;;  %s521_s5 = inlined_call_operand.vmem [shape: f32[1,128], index: 5, kind: input, shape index: {}]   ;;  %s522_s6 = inlined_call_operand.vmem [shape: f32[128,128], index: 6, kind: output, shape index: {}]  }
   0x1   :  { %v220_v0 = vld [vmem:[%s516_s0] sm:$0xff]   ;;  %v283_v12 = vld [vmem:[%s516_s0 + $0x8] sm:$0xff]   ;;  %v284_v18 = vld [vmem:[%s516_s0 + $0x10] sm:$0xff]  }
   0x2   :  { %v342_v1 = vld [vmem:[%s517_s1] ss:$0 sm:$0xff]  ;;  %v221_v2 = vunpack.c.l.bf16 %v220_v0  ;;  %v222_v5 = vunpack.c.h.bf16 %v220_v0  ;;  %v290_v13 = vld [vmem:[%s519_s3 + $0x8] sm:$0xff]   ;;  %v225_v16 = vunpack.c.l.bf16 %v283_v12  ;;  %v291_v19 = vld [vmem:[%s519_s3 + $0x10] sm:$0xff]   ;;  %v226_v22 = vunpack.c.h.bf16 %v283_v12 }
   0x3   :  { %v347_v3 = vld [vmem:[%s518_s2] ss:$0 sm:$0xff]  ;;  %v257_v17 = vunpack.c.l.bf16 %v290_v13  ;;  %v258_v23 = vunpack.c.h.bf16 %v290_v13  ;;  %v229_v30 = vunpack.c.l.bf16 %v284_v18  ;;  %v261_v31 = vunpack.c.l.bf16 %v291_v19  ;;  %v285_v40 = vld [vmem:[%s516_s0 + $0x18] sm:$0xff]   ;;  %v287_v12 = vld [vmem:[%s516_s0 + $0x28] sm:$0xff]  }
   0x4   :  { %v252_v4 = vld [vmem:[%s519_s3] sm:$0xff]   ;;  %v59_v9 = vmul.f32 %v342_v1, %v221_v2  ;;  %v60_v11 = vmul.f32 %v342_v1, %v222_v5  ;;  %v61_v26 = vmul.f32 %v342_v1, %v225_v16  ;;  %v62_v28 = vmul.f32 %v342_v1, %v226_v22  ;;  %v292_v41 = vld [vmem:[%s519_s3 + $0x18] sm:$0xff]  }
   0x5   :  { %v253_v6 = vunpack.c.l.bf16 %v252_v4  ;;  %v355_v7 = vld [vmem:[%s520_s4] ss:$0 sm:$0xff]  ;;  %v254_v8 = vunpack.c.h.bf16 %v252_v4  ;;  %v63_v38 = vmul.f32 %v342_v1, %v229_v30  ;;  %v230_v45 = vunpack.c.h.bf16 %v284_v18  ;;  %v288_v30 = vld [vmem:[%s516_s0 + $0x30] sm:$0xff]  }
   0x6   :  { %v361_v10 = vld [vmem:[%s521_s5] ss:$0 sm:$0xff]  ;;  %v79_v20 = vadd.f32 %v347_v3, %v59_v9  ;;  %v80_v21 = vadd.f32 %v347_v3, %v60_v11  ;;  %v133_v27 = vmul.f32 %v355_v7, %v257_v17  ;;  %v134_v29 = vmul.f32 %v355_v7, %v258_v23 }
   0x7   :  { %v131_v14 = vmul.f32 %v355_v7, %v253_v6  ;;  %v132_v15 = vmul.f32 %v355_v7, %v254_v8  ;;  %v81_v34 = vadd.f32 %v347_v3, %v61_v26  ;;  %v82_v36 = vadd.f32 %v347_v3, %v62_v28  ;;  %v286_v54 = vld [vmem:[%s516_s0 + $0x20] sm:$0xff]  }
   0x8   :  { %v153_v35 = vadd.f32 %v361_v10, %v133_v27  ;;  %v154_v37 = vadd.f32 %v361_v10, %v134_v29  ;;  %v135_v39 = vmul.f32 %v355_v7, %v261_v31  ;;  %v83_v47 = vadd.f32 %v347_v3, %v63_v38  ;;  %v293_v59 = vld [vmem:[%s519_s3 + $0x20] sm:$0xff]  }
   0x9   :  { %v151_v24 = vadd.f32 %v361_v10, %v131_v14  ;;  %v152_v25 = vadd.f32 %v361_v10, %v132_v15  ;;  %v262_v49 = vunpack.c.h.bf16 %v291_v19  ;;  %v64_v51 = vmul.f32 %v342_v1, %v230_v45 }
   0xa   :  { %v169_v44 = vadd.f32 %v153_v35, %v81_v34  ;;  %v170_v46 = vadd.f32 %v154_v37, %v82_v36  ;;  %v155_v48 = vadd.f32 %v361_v10, %v135_v39  ;;  %v233_v52 = vunpack.c.l.bf16 %v285_v40  ;;  %v295_v35 = vld [vmem:[%s519_s3 + $0x30] sm:$0xff]  }
   0xb   :  { %v167_v32 = vadd.f32 %v151_v24, %v79_v20  ;;  %v168_v33 = vadd.f32 %v152_v25, %v80_v21  ;;  %v265_v53 = vunpack.c.l.bf16 %v292_v41  ;;  %v136_v57 = vmul.f32 %v355_v7, %v262_v49  ;;  %v294_v21 = vld [vmem:[%s519_s3 + $0x28] sm:$0xff]  }
   0xc   :  { %v185_v50 = vmax.f32 %v169_v44, 0.0  ;;  %v186_v55 = vmax.f32 %v170_v46, 0.0  ;;  %v171_v56 = vadd.f32 %v155_v48, %v83_v47  ;;  %v234_v58 = vunpack.c.h.bf16 %v285_v40  ;;  %v289_v48 = vld [vmem:[%s516_s0 + $0x38] sm:$0xff]  }
   0xd   :  { %v183_v42 = vmax.f32 %v167_v32, 0.0  ;;  %v184_v43 = vmax.f32 %v168_v33, 0.0  ;;  %v84_v60 = vadd.f32 %v347_v3, %v64_v51  ;;  %v65_v61 = vmul.f32 %v342_v1, %v233_v52 }
   0xe   :  { %201 = vst [vmem:[%s522_s6 + $0x10] sm:$0xff] %v185_v50  ;;  %v137_v62 = vmul.f32 %v355_v7, %v265_v53  ;;  %v266_v63 = vunpack.c.h.bf16 %v292_v41  ;;  %v187_v0 = vmax.f32 %v171_v56, 0.0  ;;  %v156_v2 = vadd.f32 %v361_v10, %v136_v57  ;;  %v296_v53 = vld [vmem:[%s519_s3 + $0x38] sm:$0xff]  }
   0xf   :  { %199 = vst [vmem:[%s522_s6] sm:$0xff] %v183_v42  ;;  %v66_v4 = vmul.f32 %v342_v1, %v234_v58  ;;  %v237_v5 = vunpack.c.l.bf16 %v286_v54  ;;  %v85_v6 = vadd.f32 %v347_v3, %v65_v61  ;;  %v269_v11 = vunpack.c.l.bf16 %v293_v59 }
  0x10   :  { %200 = vst [vmem:[%s522_s6 + $0x8] sm:$0xff] %v184_v43  ;;  %v157_v8 = vadd.f32 %v361_v10, %v137_v62  ;;  %v138_v9 = vmul.f32 %v355_v7, %v266_v63  ;;  %v172_v13 = vadd.f32 %v156_v2, %v84_v60  ;;  %v238_v16 = vunpack.c.h.bf16 %v286_v54 }
  0x11   :  { %202 = vst [vmem:[%s522_s6 + $0x18] sm:$0xff] %v186_v55  ;;  %v86_v14 = vadd.f32 %v347_v3, %v66_v4  ;;  %v67_v15 = vmul.f32 %v342_v1, %v237_v5  ;;  %v139_v19 = vmul.f32 %v355_v7, %v269_v11  ;;  %v270_v20 = vunpack.c.h.bf16 %v293_v59 }
  0x12   :  { %203 = vst [vmem:[%s522_s6 + $0x20] sm:$0xff] %v187_v0  ;;  %v173_v17 = vadd.f32 %v157_v8, %v85_v6  ;;  %v158_v18 = vadd.f32 %v361_v10, %v138_v9  ;;  %v188_v22 = vmax.f32 %v172_v13, 0.0  ;;  %v68_v24 = vmul.f32 %v342_v1, %v238_v16 }
  0x13   :  { %v87_v23 = vadd.f32 %v347_v3, %v67_v15  ;;  %v241_v25 = vunpack.c.l.bf16 %v287_v12  ;;  %v159_v28 = vadd.f32 %v361_v10, %v139_v19  ;;  %v140_v29 = vmul.f32 %v355_v7, %v270_v20 }
  0x14   :  { %v189_v26 = vmax.f32 %v173_v17, 0.0  ;;  %v174_v27 = vadd.f32 %v158_v18, %v86_v14  ;;  %204 = vst [vmem:[%s522_s6 + $0x28] sm:$0xff] %v188_v22  ;;  %v88_v31 = vadd.f32 %v347_v3, %v68_v24  ;;  %v273_v33 = vunpack.c.l.bf16 %v294_v21 }
  0x15   :  { %v69_v32 = vmul.f32 %v342_v1, %v241_v25  ;;  %v242_v34 = vunpack.c.h.bf16 %v287_v12  ;;  %v175_v37 = vadd.f32 %v159_v28, %v87_v23  ;;  %v160_v38 = vadd.f32 %v361_v10, %v140_v29 }
  0x16   :  { %205 = vst [vmem:[%s522_s6 + $0x30] sm:$0xff] %v189_v26  ;;  %v190_v36 = vmax.f32 %v174_v27, 0.0  ;;  %v274_v39 = vunpack.c.h.bf16 %v294_v21  ;;  %v141_v41 = vmul.f32 %v355_v7, %v273_v33  ;;  %v245_v43 = vunpack.c.l.bf16 %v288_v30 }
  0x17   :  { %v89_v40 = vadd.f32 %v347_v3, %v69_v32  ;;  %v70_v42 = vmul.f32 %v342_v1, %v242_v34  ;;  %v191_v44 = vmax.f32 %v175_v37, 0.0  ;;  %v176_v45 = vadd.f32 %v160_v38, %v88_v31 }
  0x18   :  { %206 = vst [vmem:[%s522_s6 + $0x38] sm:$0xff] %v190_v36  ;;  %v142_v46 = vmul.f32 %v355_v7, %v274_v39  ;;  %v277_v47 = vunpack.c.l.bf16 %v295_v35  ;;  %v161_v49 = vadd.f32 %v361_v10, %v141_v41  ;;  %v71_v51 = vmul.f32 %v342_v1, %v245_v43 }
  0x19   :  { %v90_v50 = vadd.f32 %v347_v3, %v70_v42  ;;  %v246_v52 = vunpack.c.h.bf16 %v288_v30  ;;  %207 = vst [vmem:[%s522_s6 + $0x40] sm:$0xff] %v191_v44  ;;  %v192_v54 = vmax.f32 %v176_v45, 0.0  ;;  %v278_v57 = vunpack.c.h.bf16 %v295_v35 }
  0x1a   :  { %v162_v55 = vadd.f32 %v361_v10, %v142_v46  ;;  %v143_v56 = vmul.f32 %v355_v7, %v277_v47  ;;  %v177_v58 = vadd.f32 %v161_v49, %v89_v40  ;;  %v91_v59 = vadd.f32 %v347_v3, %v71_v51 }
  0x1b   :  { %v72_v60 = vmul.f32 %v342_v1, %v246_v52  ;;  %v249_v61 = vunpack.c.l.bf16 %v289_v48  ;;  %208 = vst [vmem:[%s522_s6 + $0x48] sm:$0xff] %v192_v54  ;;  %v144_v0 = vmul.f32 %v355_v7, %v278_v57  ;;  %v281_v2 = vunpack.c.l.bf16 %v296_v53 }
  0x1c   :  { %v178_v62 = vadd.f32 %v162_v55, %v90_v50  ;;  %v163_v63 = vadd.f32 %v361_v10, %v143_v56  ;;  %v193_v4 = vmax.f32 %v177_v58, 0.0  ;;  %v250_v8 = vunpack.c.h.bf16 %v289_v48 }
  0x1d   :  { %v92_v5 = vadd.f32 %v347_v3, %v72_v60  ;;  %v73_v6 = vmul.f32 %v342_v1, %v249_v61  ;;  %v164_v12 = vadd.f32 %v361_v10, %v144_v0  ;;  %v145_v13 = vmul.f32 %v355_v7, %v281_v2 }
  0x1e   :  { %v194_v9 = vmax.f32 %v178_v62, 0.0  ;;  %v179_v11 = vadd.f32 %v163_v63, %v91_v59  ;;  %209 = vst [vmem:[%s522_s6 + $0x50] sm:$0xff] %v193_v4  ;;  %v74_v15 = vmul.f32 %v342_v1, %v250_v8  ;;  %v282_v16 = vunpack.c.h.bf16 %v296_v53 }
  0x1f   :  { %v93_v14 = vadd.f32 %v347_v3, %v73_v6  ;;  %v180_v18 = vadd.f32 %v164_v12, %v92_v5  ;;  %v165_v19 = vadd.f32 %v361_v10, %v145_v13 }
  0x20   :  { %210 = vst [vmem:[%s522_s6 + $0x58] sm:$0xff] %v194_v9  ;;  %v195_v17 = vmax.f32 %v179_v11, 0.0  ;;  %v94_v20 = vadd.f32 %v347_v3, %v74_v15  ;;  %v146_v21 = vmul.f32 %v355_v7, %v282_v16 }
  0x21   :  { %v196_v22 = vmax.f32 %v180_v18, 0.0  ;;  %v181_v23 = vadd.f32 %v165_v19, %v93_v14 }
  0x22   :  { %211 = vst [vmem:[%s522_s6 + $0x60] sm:$0xff] %v195_v17  ;;  %v166_v1 = vadd.f32 %v361_v10, %v146_v21 }
  0x23   :  { %212 = vst [vmem:[%s522_s6 + $0x68] sm:$0xff] %v196_v22  ;;  %v197_v24 = vmax.f32 %v181_v23, 0.0 }
  0x24   :  { %v182_v25 = vadd.f32 %v166_v1, %v94_v20 }
  0x25   :  { %213 = vst [vmem:[%s522_s6 + $0x70] sm:$0xff] %v197_v24 }
  0x26   :  { %v198_v3 = vmax.f32 %v182_v25, 0.0 }
  0x28   :  { %214 = vst [vmem:[%s522_s6 + $0x78] sm:$0xff] %v198_v3 }

</bundles_post_ra>
